<compile_context>
chip_gen: v6e
topology: v6e:2x2x1
jax: 0.10.0
libtpu: 0.0.40
codegen_flags: <defaults>
</compile_context>

<pallas_src>
import jax
import jax.numpy as jnp
from jax.experimental import pallas as pl
from jax.experimental.pallas import tpu as pltpu

IN_DIM = 784
H1_PAD = 256    # fc1 out 250 zero-padded to 256 (lane aligned)
H2_DIM = 128
H3_DIM = 64
OUT_DIM = 10
OUT_PAD = 128   # fc4 out 10 padded to 128 (lane-dense stores)
TB_MAX = 2048


def mlp_kernel(x_ref, w1_ref, b1_ref, w2_ref, b2_ref, w3_ref, b3_ref,
               w4_ref, b4_ref, out_ref):
    # In-kernel bf16 cast (VPU work hidden under DMA/MXU); x stays f32 in HBM.
    x = x_ref[...].astype(jnp.bfloat16)                                # (TB, 784)

    # fc1 + ReLU  (dropout = identity in eval mode)
    h1 = jnp.dot(x, w1_ref[...], preferred_element_type=jnp.float32) + b1_ref[...]
    h1 = jnp.maximum(h1, 0.0)                                          # f32 (TB, 256)

    # fc2 + ReLU
    h2 = jnp.dot(h1.astype(jnp.bfloat16), w2_ref[...],
                 preferred_element_type=jnp.float32) + b2_ref[...]
    h2 = jnp.maximum(h2, 0.0)                                          # f32 (TB, 128)

    # fc3 + ReLU
    h3 = jnp.dot(h2.astype(jnp.bfloat16), w3_ref[...],
                 preferred_element_type=jnp.float32) + b3_ref[...]
    h3 = jnp.maximum(h3, 0.0)                                          # f32 (TB, 64)

    # fc4 (padded to 128 lanes; padded lanes carry bias -1e30 -> exp() == 0)
    logits = jnp.dot(h3.astype(jnp.bfloat16), w4_ref[...],
                     preferred_element_type=jnp.float32) + b4_ref[...]  # (TB, 128)

    # log_softmax over dim=1, numerically stable, all in f32. The -1e30 padded
    # lanes never win the max and contribute 0 to the sum-exp, so the result
    # on the first 10 lanes is the exact 10-way log_softmax.
    m = jnp.max(logits, axis=1, keepdims=True)
    shifted = logits - m
    lse = jnp.log(jnp.sum(jnp.exp(shifted), axis=1, keepdims=True))
    out_ref[...] = shifted - lse


def _round_up(v, m):
    return ((v + m - 1) // m) * m


def _pick_tb(b):
    if b <= 16:
        return b                              # one block covering the whole (tiny) batch
    # >= 2 grid steps so v7x's two TensorCores both get work; rows multiple of 16;
    # capped at TB_MAX for DMA / per-step-overhead efficiency.
    return min(TB_MAX, _round_up(pl.cdiv(b, 2), 16))


def network_forward(x_nchw, params):
    b = x_nchw.shape[0]
    x = x_nchw.reshape(b, -1).astype(jnp.float32)                      # (B, 784) f32
    w1, b1, w2, b2, w3, b3, w4, b4 = params

    # --- weight preparation (once, outside the kernel) -------------------
    # Zero-pad fc1 output dim 250 -> 256 and fc2 input rows to match.
    pad1 = H1_PAD - w1.shape[1]
    if pad1 > 0:
        w1 = jnp.pad(w1, ((0, 0), (0, pad1)))
        b1 = jnp.pad(b1, ((0, 0), (0, pad1)))
        w2 = jnp.pad(w2, ((0, pad1), (0, 0)))
    # Pad fc4 output dim 10 -> 128: zero weight columns, -1e30 bias so the
    # padded logits vanish under the log_softmax normalizer.
    pad4 = OUT_PAD - w4.shape[1]
    if pad4 > 0:
        w4 = jnp.pad(w4, ((0, 0), (0, pad4)))
        b4 = jnp.pad(b4, ((0, 0), (0, pad4)), constant_values=-1e30)
    # bf16 weights for the MXU path; biases stay f32 (added after f32 accumulation).
    w1, w2, w3, w4 = (w.astype(jnp.bfloat16) for w in (w1, w2, w3, w4))
    b1, b2, b3, b4 = (bb.astype(jnp.float32) for bb in (b1, b2, b3, b4))

    # --- batch tiling (no pad copy of x; trailing partial block is masked) ---
    tb = _pick_tb(b)
    grid = (pl.cdiv(b, tb),)

    def const_spec(shape):
        return pl.BlockSpec(shape, lambda i: (0, 0))

    out_padded = pl.pallas_call(
        mlp_kernel,
        out_shape=jax.ShapeDtypeStruct((b, OUT_PAD), jnp.float32),
        grid=grid,
        in_specs=[
            pl.BlockSpec((tb, IN_DIM), lambda i: (i, 0)),              # x (tiled over batch)
            const_spec((IN_DIM, H1_PAD)), const_spec((1, H1_PAD)),     # fc1
            const_spec((H1_PAD, H2_DIM)), const_spec((1, H2_DIM)),     # fc2
            const_spec((H2_DIM, H3_DIM)), const_spec((1, H3_DIM)),     # fc3
            const_spec((H3_DIM, OUT_PAD)), const_spec((1, OUT_PAD)),   # fc4 (padded N)
        ],
        out_specs=pl.BlockSpec((tb, OUT_PAD), lambda i: (i, 0)),
        compiler_params=pltpu.CompilerParams(
            dimension_semantics=("parallel",),
            vmem_limit_bytes=32 * 1024 * 1024,
        ),
    )(x, w1, b1, w2, b2, w3, b3, w4, b4)

    return out_padded[:, :OUT_DIM]


def init_params(key):
    """Deterministic init matching nn.Linear's default U(-1/sqrt(fan_in), +1/sqrt(fan_in))."""
    dims = [(784, 250), (250, 128), (128, 64), (64, 10)]
    params = []
    keys = jax.random.split(key, 2 * len(dims))
    for i, (fan_in, fan_out) in enumerate(dims):
        bound = 1.0 / (fan_in ** 0.5)
        w = jax.random.uniform(keys[2 * i], (fan_in, fan_out),
                               minval=-bound, maxval=bound, dtype=jnp.float32)
        bias = jax.random.uniform(keys[2 * i + 1], (1, fan_out),
                                  minval=-bound, maxval=bound, dtype=jnp.float32)
        params.extend([w, bias])
    return tuple(params)


if __name__ == "__main__":
    key = jax.random.PRNGKey(0)
    k_x, k_p = jax.random.split(key)

    # Small MNIST-like batch: (B=2, C=1, H=28, W=28) -> flattens to 784 features.
    x = jax.random.normal(k_x, (2, 1, 28, 28), dtype=jnp.float32)
    params = init_params(k_p)

    out = network_forward(x, params)
    jax.block_until_ready(out)

    assert out.shape == (2, 10)
    # log_softmax rows should (approximately) exponentiate-and-sum to 1.
    row_sums = jnp.sum(jnp.exp(out), axis=1)
    assert bool(jnp.all(jnp.abs(row_sums - 1.0) < 1e-4))

    print("KERNEL_OK")
</pallas_src>

<mosaic_0001>
module attributes {stable_mosaic.version = 11 : i64} {
  func.func @mlp_kernel(%arg0: i32, %arg1: memref<2x784xf32, #tpu.memory_space<vmem>>, %arg2: memref<784x256xbf16, #tpu.memory_space<vmem>>, %arg3: memref<1x256xf32, #tpu.memory_space<vmem>>, %arg4: memref<256x128xbf16, #tpu.memory_space<vmem>>, %arg5: memref<1x128xf32, #tpu.memory_space<vmem>>, %arg6: memref<128x64xbf16, #tpu.memory_space<vmem>>, %arg7: memref<1x64xf32, #tpu.memory_space<vmem>>, %arg8: memref<64x128xbf16, #tpu.memory_space<vmem>>, %arg9: memref<1x128xf32, #tpu.memory_space<vmem>>, %arg10: memref<2x128xf32, #tpu.memory_space<vmem>>) attributes {dimension_semantics = [#tpu.dimension_semantics<parallel>], iteration_bounds = array<i64: 1>, scalar_prefetch = 0 : i64, scratch_operands = 0 : i64, tpu.core_type = #tpu.core_type<tc>, window_params = [{transform_indices = @transform_0, window_bounds = array<i64: 2, 784>}, {pipeline_mode = #tpu.pipeline_mode<synchronous>, transform_indices = @transform_1, window_bounds = array<i64: 784, 256>}, {pipeline_mode = #tpu.pipeline_mode<synchronous>, transform_indices = @transform_2, window_bounds = array<i64: 1, 256>}, {pipeline_mode = #tpu.pipeline_mode<synchronous>, transform_indices = @transform_3, window_bounds = array<i64: 256, 128>}, {pipeline_mode = #tpu.pipeline_mode<synchronous>, transform_indices = @transform_4, window_bounds = array<i64: 1, 128>}, {pipeline_mode = #tpu.pipeline_mode<synchronous>, transform_indices = @transform_5, window_bounds = array<i64: 128, 64>}, {pipeline_mode = #tpu.pipeline_mode<synchronous>, transform_indices = @transform_6, window_bounds = array<i64: 1, 64>}, {pipeline_mode = #tpu.pipeline_mode<synchronous>, transform_indices = @transform_7, window_bounds = array<i64: 64, 128>}, {pipeline_mode = #tpu.pipeline_mode<synchronous>, transform_indices = @transform_8, window_bounds = array<i64: 1, 128>}, {transform_indices = @transform_9, window_bounds = array<i64: 2, 128>}]} {
    %c0 = arith.constant 0 : index
    %c0_0 = arith.constant 0 : index
    %0 = vector.load %arg1[%c0, %c0_0] : memref<2x784xf32, #tpu.memory_space<vmem>>, vector<2x784xf32>
    %1 = arith.truncf %0 : vector<2x784xf32> to vector<2x784xbf16>
    %c0_1 = arith.constant 0 : index
    %c0_2 = arith.constant 0 : index
    %2 = vector.load %arg2[%c0_1, %c0_2] : memref<784x256xbf16, #tpu.memory_space<vmem>>, vector<784x256xbf16>
    %cst = arith.constant dense<0.000000e+00> : vector<2x256xf32>
    %3 = tpu.matmul %1, %2, %cst {dimension_numbers = #tpu.dot_dimension_numbers<[1], [0], [0], [1], [0, 0, 1, 1], [], []>} : vector<2x784xbf16>, vector<784x256xbf16>, vector<2x256xf32> -> vector<2x256xf32>
    %c0_3 = arith.constant 0 : index
    %c0_4 = arith.constant 0 : index
    %4 = vector.load %arg3[%c0_3, %c0_4] : memref<1x256xf32, #tpu.memory_space<vmem>>, vector<1x256xf32>
    %5 = vector.broadcast %4 : vector<1x256xf32> to vector<2x256xf32>
    %6 = arith.addf %3, %5 : vector<2x256xf32>
    %cst_5 = arith.constant 0.000000e+00 : f32
    %7 = vector.broadcast %cst_5 : f32 to vector<2x256xf32>
    %8 = arith.maximumf %6, %7 : vector<2x256xf32>
    %9 = arith.truncf %8 : vector<2x256xf32> to vector<2x256xbf16>
    %c0_6 = arith.constant 0 : index
    %c0_7 = arith.constant 0 : index
    %10 = vector.load %arg4[%c0_6, %c0_7] : memref<256x128xbf16, #tpu.memory_space<vmem>>, vector<256x128xbf16>
    %cst_8 = arith.constant dense<0.000000e+00> : vector<2x128xf32>
    %11 = tpu.matmul %9, %10, %cst_8 {dimension_numbers = #tpu.dot_dimension_numbers<[1], [0], [0], [1], [0, 0, 1, 1], [], []>} : vector<2x256xbf16>, vector<256x128xbf16>, vector<2x128xf32> -> vector<2x128xf32>
    %c0_9 = arith.constant 0 : index
    %c0_10 = arith.constant 0 : index
    %12 = vector.load %arg5[%c0_9, %c0_10] : memref<1x128xf32, #tpu.memory_space<vmem>>, vector<1x128xf32>
    %13 = vector.broadcast %12 : vector<1x128xf32> to vector<2x128xf32>
    %14 = arith.addf %11, %13 : vector<2x128xf32>
    %cst_11 = arith.constant 0.000000e+00 : f32
    %15 = vector.broadcast %cst_11 : f32 to vector<2x128xf32>
    %16 = arith.maximumf %14, %15 : vector<2x128xf32>
    %17 = arith.truncf %16 : vector<2x128xf32> to vector<2x128xbf16>
    %c0_12 = arith.constant 0 : index
    %c0_13 = arith.constant 0 : index
    %18 = vector.load %arg6[%c0_12, %c0_13] : memref<128x64xbf16, #tpu.memory_space<vmem>>, vector<128x64xbf16>
    %cst_14 = arith.constant dense<0.000000e+00> : vector<2x64xf32>
    %19 = tpu.matmul %17, %18, %cst_14 {dimension_numbers = #tpu.dot_dimension_numbers<[1], [0], [0], [1], [0, 0, 1, 1], [], []>} : vector<2x128xbf16>, vector<128x64xbf16>, vector<2x64xf32> -> vector<2x64xf32>
    %c0_15 = arith.constant 0 : index
    %c0_16 = arith.constant 0 : index
    %20 = vector.load %arg7[%c0_15, %c0_16] : memref<1x64xf32, #tpu.memory_space<vmem>>, vector<1x64xf32>
    %21 = vector.broadcast %20 : vector<1x64xf32> to vector<2x64xf32>
    %22 = arith.addf %19, %21 : vector<2x64xf32>
    %cst_17 = arith.constant 0.000000e+00 : f32
    %23 = vector.broadcast %cst_17 : f32 to vector<2x64xf32>
    %24 = arith.maximumf %22, %23 : vector<2x64xf32>
    %25 = arith.truncf %24 : vector<2x64xf32> to vector<2x64xbf16>
    %c0_18 = arith.constant 0 : index
    %c0_19 = arith.constant 0 : index
    %26 = vector.load %arg8[%c0_18, %c0_19] : memref<64x128xbf16, #tpu.memory_space<vmem>>, vector<64x128xbf16>
    %cst_20 = arith.constant dense<0.000000e+00> : vector<2x128xf32>
    %27 = tpu.matmul %25, %26, %cst_20 {dimension_numbers = #tpu.dot_dimension_numbers<[1], [0], [0], [1], [0, 0, 1, 1], [], []>} : vector<2x64xbf16>, vector<64x128xbf16>, vector<2x128xf32> -> vector<2x128xf32>
    %c0_21 = arith.constant 0 : index
    %c0_22 = arith.constant 0 : index
    %28 = vector.load %arg9[%c0_21, %c0_22] : memref<1x128xf32, #tpu.memory_space<vmem>>, vector<1x128xf32>
    %29 = vector.broadcast %28 : vector<1x128xf32> to vector<2x128xf32>
    %30 = arith.addf %27, %29 : vector<2x128xf32>
    %cst_23 = arith.constant dense<0xFF800000> : vector<2xf32>
    %31 = vector.multi_reduction <maximumf>, %30, %cst_23 [1] : vector<2x128xf32> to vector<2xf32>
    %32 = vector.shape_cast %31 : vector<2xf32> to vector<2x1xf32>
    %33 = vector.broadcast %32 : vector<2x1xf32> to vector<2x128xf32>
    %34 = arith.subf %30, %33 : vector<2x128xf32>
    %35 = math.exp %34 : vector<2x128xf32>
    %cst_24 = arith.constant dense<0.000000e+00> : vector<2xf32>
    %36 = vector.multi_reduction <add>, %35, %cst_24 [1] : vector<2x128xf32> to vector<2xf32>
    %37 = vector.shape_cast %36 : vector<2xf32> to vector<2x1xf32>
    %38 = math.log %37 : vector<2x1xf32>
    %39 = vector.broadcast %38 : vector<2x1xf32> to vector<2x128xf32>
    %40 = arith.subf %34, %39 : vector<2x128xf32>
    %c0_25 = arith.constant 0 : index
    %c0_26 = arith.constant 0 : index
    %41 = vector.load %arg10[%c0_25, %c0_26] : memref<2x128xf32, #tpu.memory_space<vmem>>, vector<2x128xf32>
    tpu.vector_store %arg10[%c0_25, %c0_26], %40 {strides = array<i32>} : memref<2x128xf32, #tpu.memory_space<vmem>>, vector<2x128xf32>,
    return
  }
  func.func @transform_0(%arg0: i32) -> (i32, i32) {
    %c0_i32 = arith.constant 0 : i32
    %c0_i32_0 = arith.constant 0 : i32
    return %arg0, %c0_i32 : i32, i32
  }
  func.func @transform_1(%arg0: i32) -> (i32, i32) {
    %c0_i32 = arith.constant 0 : i32
    %c0_i32_0 = arith.constant 0 : i32
    %c0_i32_1 = arith.constant 0 : i32
    return %c0_i32, %c0_i32_0 : i32, i32
  }
  func.func @transform_2(%arg0: i32) -> (i32, i32) {
    %c0_i32 = arith.constant 0 : i32
    %c0_i32_0 = arith.constant 0 : i32
    %c0_i32_1 = arith.constant 0 : i32
    return %c0_i32, %c0_i32_0 : i32, i32
  }
  func.func @transform_3(%arg0: i32) -> (i32, i32) {
    %c0_i32 = arith.constant 0 : i32
    %c0_i32_0 = arith.constant 0 : i32
    %c0_i32_1 = arith.constant 0 : i32
    return %c0_i32, %c0_i32_0 : i32, i32
  }
  func.func @transform_4(%arg0: i32) -> (i32, i32) {
    %c0_i32 = arith.constant 0 : i32
    %c0_i32_0 = arith.constant 0 : i32
    %c0_i32_1 = arith.constant 0 : i32
    return %c0_i32, %c0_i32_0 : i32, i32
  }
  func.func @transform_5(%arg0: i32) -> (i32, i32) {
    %c0_i32 = arith.constant 0 : i32
    %c0_i32_0 = arith.constant 0 : i32
    %c0_i32_1 = arith.constant 0 : i32
    return %c0_i32, %c0_i32_0 : i32, i32
  }
  func.func @transform_6(%arg0: i32) -> (i32, i32) {
    %c0_i32 = arith.constant 0 : i32
    %c0_i32_0 = arith.constant 0 : i32
    %c0_i32_1 = arith.constant 0 : i32
    return %c0_i32, %c0_i32_0 : i32, i32
  }
  func.func @transform_7(%arg0: i32) -> (i32, i32) {
    %c0_i32 = arith.constant 0 : i32
    %c0_i32_0 = arith.constant 0 : i32
    %c0_i32_1 = arith.constant 0 : i32
    return %c0_i32, %c0_i32_0 : i32, i32
  }
  func.func @transform_8(%arg0: i32) -> (i32, i32) {
    %c0_i32 = arith.constant 0 : i32
    %c0_i32_0 = arith.constant 0 : i32
    %c0_i32_1 = arith.constant 0 : i32
    return %c0_i32, %c0_i32_0 : i32, i32
  }
  func.func @transform_9(%arg0: i32) -> (i32, i32) {
    %c0_i32 = arith.constant 0 : i32
    %c0_i32_0 = arith.constant 0 : i32
    return %arg0, %c0_i32 : i32, i32
  }
}

</mosaic_0001>

<bundles_post_ra>
// kernel: tpu_custom_call.1
= control target key start
LH: loop header
LB: loop body
LE: loop exit
PB: predicated region body
PF: predicated region fallthrough
CT: control target
= control target key end

     0   :  { %14 = vsyncpa [#allocation3], 0  ;;  %s1901_s0 = inlined_call_operand.vmem [shape: f32[2,784], index: 0, kind: input, shape index: {}]   ;;  %s1902_s1 = inlined_call_operand.hbm [shape: bf16[784,256], index: 1, kind: input, shape index: {}]   ;;  %s1903_s2 = inlined_call_operand.vmem [shape: f32[1,256], index: 2, kind: input, shape index: {}]   ;;  %s1904_s3 = inlined_call_operand.hbm [shape: bf16[256,128], index: 3, kind: input, shape index: {}]   ;;  %s1905_s4 = inlined_call_operand.vmem [shape: f32[1,128], index: 4, kind: input, shape index: {}]   ;;  %s1906_s5 = inlined_call_operand.vmem [shape: bf16[128,64], index: 5, kind: input, shape index: {}]   ;;  %s1907_s6 = inlined_call_operand.vmem [shape: f32[1,64], index: 6, kind: input, shape index: {}]   ;;  %s1908_s7 = inlined_call_operand.vmem [shape: bf16[64,128], index: 7, kind: input, shape index: {}]   ;;  %s1909_s8 = inlined_call_operand.vmem [shape: f32[1,128], index: 8, kind: input, shape index: {}]   ;;  %s1910_s9 = inlined_call_operand.hbm [shape: f32[2,128], index: 9, kind: output, shape index: {}]  }
   0x1   :  { %15 = vsyncpa [#allocation6], 0 }
   0x2   :  { %16 = vsyncpa [#allocation4], 0  ;;  %s1745_s30 = smov [#allocation2]  }
   0x3   :  { %s24_s10 = sshll.u32 %s1745_s30, 4  ;;  %s25_s10 = int_to_ptr.vmem [resolvable:$true] %s24_s10 }
   0x4   :  { %s1687_s11 = scalar_lea.vmem %s25_s10, 12544  ;;  %p1692_p1 = scmp.lt.s32.totalorder %s25_s10, %s25_s10 }
   0x5   :  { %p1688_p0 = scmp.ne.s32.totalorder %s25_s10, %s1687_s11  ;;  %p1693_p2 = scmp.lt.s32.totalorder %s1687_s11, %s1687_s11 }
   0x7   :  { %p1694_p3 = por %p1693_p2, %p1692_p1 }
   0x9   :  { %p1695_p4 = pnand %p1694_p3, %p1688_p0 }
   0xb   :  { %1698 = shalt.err (!%p1695_p4)
}
   0xc   :  { %s1746_s12 = smov 128   ;;  %s1747_s13 = smov 8  }
   0xd   :  { %30 = dma.hbm_to_vmem [thread:$0]  %s1902_s1, 12544, %s25_s10, [#allocation3], %s1746_s12, %s1746_s12, %s1747_s13  }
   0xe   :  { %s1748_s16 = smov [#allocation5]  }
   0xf   :  { %s38_s17 = sshll.u32 %s1748_s16, 4  ;;  %s39_s17 = int_to_ptr.vmem [resolvable:$true] %s38_s17 }
  0x10   :  { %s1707_s18 = scalar_lea.vmem %s39_s17, 2048  ;;  %p1712_p6 = scmp.lt.s32.totalorder %s39_s17, %s39_s17 }
  0x11   :  { %p1708_p5 = scmp.ne.s32.totalorder %s39_s17, %s1707_s18  ;;  %p1713_p7 = scmp.lt.s32.totalorder %s1707_s18, %s1707_s18 }
  0x13   :  { %p1714_p8 = por %p1713_p7, %p1712_p6 }
  0x15   :  { %p1715_p9 = pnand %p1714_p8, %p1708_p5 }
  0x17   :  { %1718 = shalt.err (!%p1715_p9)
}
  0x18   :  { %s1749_s19 = smov 64   ;;  %s1750_s20 = smov 4  }
  0x19   :  { %44 = dma.hbm_to_vmem [thread:$0]  %s1904_s3, 2048, %s39_s17, [#allocation6], %s1749_s19, %s1749_s19, %s1750_s20  }
  0x1a   :  { %1739 = dma.done.wait [#allocation3], 12544  }
  0x1b   :  { %1740 = vsyncadd [#allocation3], 4294954752 }
  0x1c   :  { %1741 = dma.done.wait [#allocation6], 2048  }
  0x1d   :  { %1742 = vsyncadd [#allocation6], 4294965248  ;;  %v1498_v0 = vld [vmem:[#allocation2 + $0x74] ss:$8 sps:$4 sm:$0xff]   ;;  %v1500_v1 = vld [vmem:[#allocation2 + $0x70] ss:$8 sps:$4 sm:$0xff]   ;;  %v70_v37 = vlaneseq }
  0x1e   :  { %717 = vmatprep.subr.bf16.mxu0 %v1498_v0  ;;  %v1501_v2 = vld [vmem:[#allocation2 + $0x174] ss:$8 sps:$4 sm:$0xff]   ;;  %v1503_v3 = vld [vmem:[#allocation2 + $0x170] ss:$8 sps:$4 sm:$0xff]   ;;  %v1504_v4 = vld [vmem:[#allocation2 + $0x64] ss:$8 sps:$4 sm:$0xff]  }
  0x1f   :  { %718 = vmatpush1.bf16.msra.mxu0 %v1500_v1  ;;  %v1506_v5 = vld [vmem:[#allocation2 + $0x60] ss:$8 sps:$4 sm:$0xff]   ;;  %758 = vmatprep.subr.bf16.mxu1 %v1501_v2  ;;  %v1507_v6 = vld [vmem:[#allocation2 + $0x164] ss:$8 sps:$4 sm:$0xff]   ;;  %v1510_v8 = vld [vmem:[#allocation2 + $0x54] ss:$8 sps:$4 sm:$0xff]  }
  0x20   :  { %759 = vmatpush1.bf16.msra.mxu1 %v1503_v3  ;;  %719 = vmatprep.subr.bf16.mxu0 %v1504_v4  ;;  %v1509_v7 = vld [vmem:[#allocation2 + $0x160] ss:$8 sps:$4 sm:$0xff]   ;;  %v1512_v9 = vld [vmem:[#allocation2 + $0x50] ss:$8 sps:$4 sm:$0xff]   ;;  %v1513_v10 = vld [vmem:[#allocation2 + $0x154] ss:$8 sps:$4 sm:$0xff]  }
  0x21   :  { %760 = vmatprep.subr.bf16.mxu1 %v1507_v6  ;;  %v1516_v11 = vld [vmem:[#allocation2 + $0x44] ss:$8 sps:$4 sm:$0xff]   ;;  %v1515_v12 = vld [vmem:[#allocation2 + $0x150] ss:$8 sps:$4 sm:$0xff]   ;;  %v1518_v14 = vld [vmem:[#allocation2 + $0x40] ss:$8 sps:$4 sm:$0xff]  }
  0x22   :  { %v1519_v13 = vld [vmem:[#allocation2 + $0x144] ss:$8 sps:$4 sm:$0xff]   ;;  %v1522_v15 = vld [vmem:[#allocation2 + $0x34] ss:$8 sps:$4 sm:$0xff]   ;;  %v1521_v16 = vld [vmem:[#allocation2 + $0x140] ss:$8 sps:$4 sm:$0xff]  }
  0x23   :  { %720 = vmatpush1.bf16.msra.mxu0 %v1506_v5  ;;  %v1525_v17 = vld [vmem:[#allocation2 + $0x134] ss:$8 sps:$4 sm:$0xff]   ;;  %v1524_v18 = vld [vmem:[#allocation2 + $0x30] ss:$8 sps:$4 sm:$0xff]   ;;  %v1528_v19 = vld [vmem:[#allocation2 + $0x24] ss:$8 sps:$4 sm:$0xff]  }
  0x24   :  { %721 = vmatprep.subr.bf16.mxu0 %v1510_v8  ;;  %761 = vmatpush1.bf16.msra.mxu1 %v1509_v7  ;;  %v1527_v20 = vld [vmem:[#allocation2 + $0x130] ss:$8 sps:$4 sm:$0xff]   ;;  %v1531_v21 = vld [vmem:[#allocation2 + $0x124] ss:$8 sps:$4 sm:$0xff]   ;;  %v1530_v22 = vld [vmem:[#allocation2 + $0x20] ss:$8 sps:$4 sm:$0xff]  }
  0x25   :  { %762 = vmatprep.subr.bf16.mxu1 %v1513_v10  ;;  %v1534_v23 = vld [vmem:[#allocation2 + $0x14] ss:$8 sps:$4 sm:$0xff]   ;;  %v1533_v24 = vld [vmem:[#allocation2 + $0x120] ss:$8 sps:$4 sm:$0xff]   ;;  %v1536_v26 = vld [vmem:[#allocation2 + $0x10] ss:$8 sps:$4 sm:$0xff]  }
  0x26   :  { %v1537_v25 = vld [vmem:[#allocation2 + $0x114] ss:$8 sps:$4 sm:$0xff]   ;;  %v1540_v27 = vld [vmem:[#allocation2 + $0x4] ss:$8 sps:$4 sm:$0xff]   ;;  %v1539_v28 = vld [vmem:[#allocation2 + $0x110] ss:$8 sps:$4 sm:$0xff]  }
  0x27   :  { %722 = vmatpush1.bf16.msra.mxu0 %v1512_v9  ;;  %v1543_v29 = vld [vmem:[#allocation2 + $0x104] ss:$8 sps:$4 sm:$0xff]   ;;  %v1542_v30 = vld [vmem:[#allocation2] ss:$8 sps:$4 sm:$0xff]   ;;  %v1546_v31 = vld [vmem:[#allocation2 + $0xf4] ss:$8 sps:$4 sm:$0xff]  }
  0x28   :  { %723 = vmatprep.subr.bf16.mxu0 %v1516_v11  ;;  %763 = vmatpush1.bf16.msra.mxu1 %v1515_v12  ;;  %v1545_v32 = vld [vmem:[#allocation2 + $0x100] ss:$8 sps:$4 sm:$0xff]   ;;  %v1549_v33 = vld [vmem:[#allocation2 + $0x1f4] ss:$8 sps:$4 sm:$0xff]   ;;  %v1548_v34 = vld [vmem:[#allocation2 + $0xf0] ss:$8 sps:$4 sm:$0xff]  }
  0x29   :  { %764 = vmatprep.subr.bf16.mxu1 %v1519_v13  ;;  %v1751_v35 = vmov 1983009808   ;;  %v1552_v38 = vld [vmem:[#allocation2 + $0xe4] ss:$8 sps:$4 sm:$0xff]   ;;  %v1551_v39 = vld [vmem:[#allocation2 + $0x1f0] ss:$8 sps:$4 sm:$0xff]  }
  0x2a   :  { %v68_v36 = vunpack.c.l.s4 %v1751_v35  ;;  %v1555_v40 = vld [vmem:[#allocation2 + $0x1e4] ss:$8 sps:$4 sm:$0xff]   ;;  %v1554_v41 = vld [vmem:[#allocation2 + $0xe0] ss:$8 sps:$4 sm:$0xff]   ;;  %v1812_v43 = vshrl.u32 %v70_v37, 7  ;;  %vm713_vm0 = vcmask 130048  }
  0x2b   :  { %724 = vmatpush1.bf16.msra.mxu0 %v1518_v14  ;;  %v1558_v44 = vld [vmem:[#allocation2 + $0xd4] ss:$8 sps:$4 sm:$0xff]   ;;  %v1557_v45 = vld [vmem:[#allocation2 + $0x1e0] ss:$8 sps:$4 sm:$0xff]   ;;  %v1560_v47 = vld [vmem:[#allocation2 + $0xd0] ss:$8 sps:$4 sm:$0xff]  }
  0x2c   :  { %725 = vmatprep.subr.bf16.mxu0 %v1522_v15  ;;  %765 = vmatpush1.bf16.msra.mxu1 %v1521_v16  ;;  %v69_v42 = vunpack.c.0.s8 %v68_v36  ;;  %v1561_v46 = vld [vmem:[#allocation2 + $0x1d4] ss:$8 sps:$4 sm:$0xff]   ;;  %v1564_v49 = vld [vmem:[#allocation2 + $0xc4] ss:$8 sps:$4 sm:$0xff]   ;;  %v1563_v50 = vld [vmem:[#allocation2 + $0x1d0] ss:$8 sps:$4 sm:$0xff]  }
  0x2d   :  { %766 = vmatprep.subr.bf16.mxu1 %v1525_v17  ;;  %v1567_v51 = vld [vmem:[#allocation2 + $0x1c4] ss:$8 sps:$4 sm:$0xff]   ;;  %v1566_v53 = vld [vmem:[#allocation2 + $0xc0] ss:$8 sps:$4 sm:$0xff]   ;;  %v1570_v56 = vld [vmem:[#allocation2 + $0xb4] ss:$8 sps:$4 sm:$0xff]  }
  0x2e   :  { %v1815_v48 = vsub.s32 %v69_v42, %v1812_v43  ;;  %v62_v52 = vld [vmem:[%s1901_s0] sm:$0xff]  ;;  %v1573_v60 = vld [vmem:[#allocation2 + $0x1b4] ss:$8 sps:$4 sm:$0xff]   ;;  %v1572_v61 = vld [vmem:[#allocation2 + $0xb0] ss:$8 sps:$4 sm:$0xff]   ;;  %vm1754_vm1 = vmmov 0  }
  0x2f   :  { %726 = vmatpush1.bf16.msra.mxu0 %v1524_v18  ;;  %v66_v55 = vcombine.high %v62_v52, %v62_v52  ;;  %v1569_v57 = vld [vmem:[#allocation2 + $0x1c0] ss:$8 sps:$4 sm:$0xff]   ;;  %v1576_v0 = vld [vmem:[#allocation2 + $0xa4] ss:$8 sps:$4 sm:$0xff]   ;;  %v1575_v1 = vld [vmem:[#allocation2 + $0x1b0] ss:$8 sps:$4 sm:$0xff]  }
  0x30   :  { %727 = vmatprep.subr.bf16.mxu0 %v1528_v19  ;;  %767 = vmatpush1.bf16.msra.mxu1 %v1527_v20  ;;  %v73_v54 = vrot.slane %v62_v52, %v1815_v48  ;;  %v1579_v3 = vld [vmem:[#allocation2 + $0x1a4] ss:$8 sps:$4 sm:$0xff]   ;;  %v1578_v4 = vld [vmem:[#allocation2 + $0xa0] ss:$8 sps:$4 sm:$0xff]   ;;  %v1582_v5 = vld [vmem:[#allocation2 + $0x94] ss:$8 sps:$4 sm:$0xff]  }
  0x31   :  { %768 = vmatprep.subr.bf16.mxu1 %v1531_v21  ;;  %v80_v59 = vrot.slane %v66_v55, %v1815_v48  ;;  %v1581_v6 = vld [vmem:[#allocation2 + $0x1a0] ss:$8 sps:$4 sm:$0xff]   ;;  %v1585_v7 = vld [vmem:[#allocation2 + $0x194] ss:$8 sps:$4 sm:$0xff]   ;;  %v1584_v8 = vld [vmem:[#allocation2 + $0x90] ss:$8 sps:$4 sm:$0xff]  }
  0x32   :  { %v81_v58 = vcombine.high %v73_v54, %v73_v54  ;;  %v1588_v9 = vld [vmem:[#allocation2 + $0x84] ss:$8 sps:$4 sm:$0xff]   ;;  %v1587_v10 = vld [vmem:[#allocation2 + $0x190] ss:$8 sps:$4 sm:$0xff]   ;;  %v1590_v12 = vld [vmem:[#allocation2 + $0x80] ss:$8 sps:$4 sm:$0xff]   ;;  %v106_v15 = vpack.c.bf16 %v73_v54, %v73_v54 }
  0x33   :  { %728 = vmatpush1.bf16.msra.mxu0 %v1530_v22  ;;  %v82_v63 = vcombine.high %v80_v59, %v80_v59  ;;  %v1591_v11 = vld [vmem:[#allocation2 + $0x184] ss:$8 sps:$4 sm:$0xff]   ;;  %v1596_v13 = vld [vmem:[#allocation2 + $0x274] ss:$8 sps:$4 sm:$0xff]   ;;  %v1593_v14 = vld [vmem:[#allocation2 + $0x180] ss:$8 sps:$4 sm:$0xff]   ;;  %v108_v18 = vpack.c.bf16 %v80_v59, %v80_v59 }
  0x34   :  { %729 = vmatprep.subr.bf16.mxu0 %v1534_v23  ;;  %769 = vmatpush1.bf16.msra.mxu1 %v1533_v24  ;;  %v107_v62 = vpack.c.bf16 %v81_v58, %v81_v58  ;;  %v1594_v16 = vld [vmem:[#allocation2 + $0x270] ss:$8 sps:$4 sm:$0xff]   ;;  %v1600_v17 = vld [vmem:[#allocation2 + $0x264] ss:$8 sps:$4 sm:$0xff]   ;;  %v1598_v20 = vld [vmem:[#allocation2 + $0x260] ss:$8 sps:$4 sm:$0xff]  }
  0x35   :  { %770 = vmatprep.subr.bf16.mxu1 %v1537_v25  ;;  %v109_v2 = vpack.c.bf16 %v82_v63, %v82_v63  ;;  %v1642_v19 = vld [vmem:[#allocation2 + $0x304] ss:$8 sps:$4 sm:$0xff]   ;;  %v1640_v21 = vld [vmem:[#allocation2 + $0x300] ss:$8 sps:$4 sm:$0xff]   ;;  %v1603_v23 = vld [vmem:[#allocation2 + $0x254] ss:$8 sps:$4 sm:$0xff]  }
  0x36   :  { %749 = vmatprep.mubr.bf16.mxu0 %v107_v62  ;;  %v63_v22 = vld [vmem:[%s1901_s0 + $0x8] sm:$0x3f]  ;;  %v1607_v35 = vld [vmem:[#allocation2 + $0x230] ss:$8 sps:$4 sm:$0xff]   ;;  %v1621_v42 = vld [vmem:[#allocation2 + $0x2f4] ss:$8 sps:$4 sm:$0xff]  }
  0x37   :  { %730 = vmatpush1.bf16.msra.mxu0 %v1536_v26  ;;  %790 = vmatprep.mubr.bf16.mxu1 %v109_v2  ;;  %v83_v24 = vcombine.high %v63_v22, %v63_v22  ;;  %v1826_v25 = vrot.slane %v63_v22, %v1815_v48  ;;  %v1612_v36 = vld [vmem:[#allocation2 + $0x224] ss:$8 sps:$4 sm:$0xff]   ;;  %v1610_v37 = vld [vmem:[#allocation2 + $0x220] ss:$8 sps:$4 sm:$0xff]   ;;  %v1631_v52 = vld [vmem:[#allocation2 + $0x2b0] ss:$8 sps:$4 sm:$0xff]  }
  0x38   :  { %731 = vmatprep.subr.bf16.mxu0 %v1540_v27  ;;  %771 = vmatpush1.bf16.msra.mxu1 %v1539_v28  ;;  %v1601_v28 = vld [vmem:[#allocation2 + $0x250] ss:$8 sps:$4 sm:$0xff]   ;;  %v1634_v54 = vld [vmem:[#allocation2 + $0x2a0] ss:$8 sps:$4 sm:$0xff]   ;;  %v1639_v55 = vld [vmem:[#allocation2 + $0x294] ss:$8 sps:$4 sm:$0xff]  }
  0x39   :  { %772 = vmatprep.subr.bf16.mxu1 %v1543_v29  ;;  %v97_v26 = vrot.slane %v83_v24, %v1815_v48  ;;  %v98_v27 = vcombine.high %v1826_v25, %v1826_v25  ;;  %v1752_v29 = vmov 0   ;;  %v1625_v48 = vld [vmem:[#allocation2 + $0x2d0] ss:$8 sps:$4 sm:$0xff]   ;;  %v1643_v58 = vld [vmem:[#allocation2 + $0x280] ss:$8 sps:$4 sm:$0xff]   ;;  %v110_v59 = vpack.c.bf16 %v1826_v25, %v1826_v25 }
  0x3a   :  { %v1649_v62 = vld [vmem:[#allocation5 + $0x70] sm:$0xff]   ;;  %v1653_v2 = vld [vmem:[#allocation5 + $0x60] sm:$0xff]   ;;  %v215_v25 = vsub.s32 0, %v1812_v43  ;;  %vm1214_vm2 = vcmask 523264   ;;  %vm1258_vm3 = vcmask 1041408  }
  0x3b   :  { %732 = vmatpush1.bf16.msra.mxu0 %v1542_v30  ;;  %v1606_v30 = vld [vmem:[#allocation2 + $0x244] ss:$8 sps:$4 sm:$0xff]  }
  0x3c   :  { %733 = vmatprep.subr.bf16.mxu0 %v1546_v31  ;;  %773 = vmatpush1.bf16.msra.mxu1 %v1545_v32  ;;  %v111_v31 = vpack.c.bf16 %v98_v27, %v98_v27  ;;  %v112_v32 = vpack.c.bf16 %v97_v26, %v97_v26  ;;  %v1650_v63 = vld [vmem:[#allocation5 + $0x30] sm:$0xff]   ;;  %v219_v27 = vsub.s32 1, %v1812_v43  ;;  %v1663_v43 = vld [vmem:[%s1906_s5 + $0x38] sm:$0xff]  }
  0x3d   :  { %774 = vmatprep.subr.bf16.mxu1 %v1549_v33  ;;  %v1604_v33 = vld [vmem:[#allocation2 + $0x240] ss:$8 sps:$4 sm:$0xff]  }
  0x3e   :  { %v211_v26 = vld [vmem:[%s1903_s2] sm:$0x3] }
  0x3f   :  { %734 = vmatpush2.bf16.msra.mxu0 %v1548_v34  ;;  %v1609_v34 = vld [vmem:[#allocation2 + $0x234] ss:$8 sps:$4 sm:$0xff]  }
  0x40   :  { %735 = vmatprep.subr.bf16.mxu0 %v1552_v38  ;;  %775 = vmatpush2.bf16.msra.mxu1 %v1551_v39  ;;  %v1615_v38 = vld [vmem:[#allocation2 + $0x214] ss:$8 sps:$4 sm:$0xff]   ;;  %v1613_v39 = vld [vmem:[#allocation2 + $0x210] ss:$8 sps:$4 sm:$0xff]  }
  0x41   :  { %776 = vmatprep.subr.bf16.mxu1 %v1555_v40  ;;  %v1618_v40 = vld [vmem:[#allocation2 + $0x204] ss:$8 sps:$4 sm:$0xff]  }
  0x43   :  { %736 = vmatpush2.bf16.msra.mxu0 %v1554_v41  ;;  %v1616_v41 = vld [vmem:[#allocation2 + $0x200] ss:$8 sps:$4 sm:$0xff]  }
  0x44   :  { %737 = vmatprep.subr.bf16.mxu0 %v1558_v44  ;;  %777 = vmatpush2.bf16.msra.mxu1 %v1557_v45  ;;  %v1619_v44 = vld [vmem:[#allocation2 + $0x2f0] ss:$8 sps:$4 sm:$0xff]   ;;  %v1624_v45 = vld [vmem:[#allocation2 + $0x2e4] ss:$8 sps:$4 sm:$0xff]  }
  0x45   :  { %778 = vmatprep.subr.bf16.mxu1 %v1561_v46  ;;  %v1622_v46 = vld [vmem:[#allocation2 + $0x2e0] ss:$8 sps:$4 sm:$0xff]  }
  0x47   :  { %738 = vmatpush2.bf16.msra.mxu0 %v1560_v47  ;;  %v1627_v47 = vld [vmem:[#allocation2 + $0x2d4] ss:$8 sps:$4 sm:$0xff]  }
  0x48   :  { %739 = vmatprep.subr.bf16.mxu0 %v1564_v49  ;;  %779 = vmatpush2.bf16.msra.mxu1 %v1563_v50  ;;  %v1630_v49 = vld [vmem:[#allocation2 + $0x2c4] ss:$8 sps:$4 sm:$0xff]   ;;  %v1628_v50 = vld [vmem:[#allocation2 + $0x2c0] ss:$8 sps:$4 sm:$0xff]  }
  0x49   :  { %780 = vmatprep.subr.bf16.mxu1 %v1567_v51  ;;  %v1633_v51 = vld [vmem:[#allocation2 + $0x2b4] ss:$8 sps:$4 sm:$0xff]  }
  0x4b   :  { %740 = vmatpush2.bf16.msra.mxu0 %v1566_v53  ;;  %v1636_v53 = vld [vmem:[#allocation2 + $0x2a4] ss:$8 sps:$4 sm:$0xff]  }
  0x4c   :  { %741 = vmatprep.subr.bf16.mxu0 %v1570_v56  ;;  %781 = vmatpush2.bf16.msra.mxu1 %v1569_v57  ;;  %v1637_v56 = vld [vmem:[#allocation2 + $0x290] ss:$8 sps:$4 sm:$0xff]   ;;  %v1645_v57 = vld [vmem:[#allocation2 + $0x284] ss:$8 sps:$4 sm:$0xff]  }
  0x4d   :  { %782 = vmatprep.subr.bf16.mxu1 %v1573_v60  ;;  %v1647_v60 = vld [vmem:[#allocation5 + $0x78] sm:$0xff]  }
  0x4f   :  { %742 = vmatpush2.bf16.msra.mxu0 %v1572_v61  ;;  %v1648_v61 = vld [vmem:[#allocation5 + $0x38] sm:$0xff]  }
  0x50   :  { %743 = vmatprep.subr.bf16.mxu0 %v1576_v0  ;;  %783 = vmatpush2.bf16.msra.mxu1 %v1575_v1  ;;  %v1651_v0 = vld [vmem:[#allocation5 + $0x68] sm:$0xff]  }
  0x51   :  { %784 = vmatprep.subr.bf16.mxu1 %v1579_v3  ;;  %v1652_v1 = vld [vmem:[#allocation5 + $0x28] sm:$0xff]   ;;  %v1654_v3 = vld [vmem:[#allocation5 + $0x20] sm:$0xff]  }
  0x53   :  { %744 = vmatpush2.bf16.msra.mxu0 %v1578_v4  ;;  %v1655_v4 = vld [vmem:[#allocation5 + $0x58] sm:$0xff]  }
  0x54   :  { %745 = vmatprep.subr.bf16.mxu0 %v1582_v5  ;;  %785 = vmatpush2.bf16.msra.mxu1 %v1581_v6  ;;  %v1656_v5 = vld [vmem:[#allocation5 + $0x18] sm:$0xff]   ;;  %v1657_v6 = vld [vmem:[#allocation5 + $0x50] sm:$0xff]  }
  0x55   :  { %786 = vmatprep.subr.bf16.mxu1 %v1585_v7  ;;  %v1658_v7 = vld [vmem:[#allocation5 + $0x10] sm:$0xff]  }
  0x57   :  { %746 = vmatpush2.bf16.msra.mxu0 %v1584_v8  ;;  %v1659_v8 = vld [vmem:[#allocation5 + $0x48] sm:$0xff]  }
  0x58   :  { %747 = vmatprep.subr.bf16.mxu0 %v1588_v9  ;;  %787 = vmatpush2.bf16.msra.mxu1 %v1587_v10  ;;  %v1660_v9 = vld [vmem:[#allocation5 + $0x8] sm:$0xff]   ;;  %v1661_v10 = vld [vmem:[#allocation5 + $0x40] sm:$0xff]  }
  0x59   :  { %788 = vmatprep.subr.bf16.mxu1 %v1591_v11  ;;  %v1662_v11 = vld [vmem:[#allocation5] sm:$0xff]  }
  0x5b   :  { %748 = vmatpush2.bf16.msra.mxu0 %v1590_v12  ;;  %v1753_v12 = vmov 0.0  }
  0x5c   :  { %799 = vmatprep.subr.bf16.mxu0 %v1596_v13  ;;  %789 = vmatpush2.bf16.msra.mxu1 %v1593_v14 }
  0x5d   :  { %854 = vmatprep.subr.bf16.mxu1 %v1642_v19 }
  0x5e   :  { %750 = vmatmul.mubr.bf16.vlgmr.msra.gmra.mxu0 %v106_v15 }
  0x5f   :  { %800 = vmatpush1.bf16.msra.mxu0 %v1594_v16  ;;  %791 = vmatmul.mubr.bf16.vlgmr.msra.gmra.mxu1 %v108_v18 }
  0x60   :  { %801 = vmatprep.subr.bf16.mxu0 %v1600_v17  ;;  %855 = vmatpush1.bf16.msra.mxu1 %v1640_v21 }
  0x61   :  { %872 = vmatprep.mubr.bf16.mxu1 %v1752_v29  ;;  %831 = vmatprep.mubr.bf16.mxu0 %v111_v31  ;;  %v220_v29 = vrot.slane %v211_v26, %v219_v27 }
  0x62   :  { %1419 = vmatprep.subr.bf16.mxu1 %v1647_v60 }
  0x63   :  { %802 = vmatpush1.bf16.msra.mxu0 %v1598_v20 }
  0x64   :  { %803 = vmatprep.subr.bf16.mxu0 %v1603_v23 }
  0x67   :  { %804 = vmatpush1.bf16.msra.mxu0 %v1601_v28  ;;  %1386 = vmatmul.mubr.msk.bf16.vlgmr.msra.gmra.mxu1 %vm713_vm0, %v112_v32  ;;  %v216_v28 = vrot.slane %v211_v26, %v215_v25 }
  0x68   :  { %805 = vmatprep.subr.bf16.mxu0 %v1606_v30  ;;  %1420 = vmatpush3.bf16.msra.mxu1 %v1648_v61 }
  0x69   :  { %1421 = vmatprep.subr.bf16.mxu1 %v1649_v62 }
  0x6b   :  { %806 = vmatpush1.bf16.msra.mxu0 %v1604_v33 }
  0x6c   :  { %807 = vmatprep.subr.bf16.mxu0 %v1609_v34  ;;  %1422 = vmatpush3.bf16.msra.mxu1 %v1650_v63 }
  0x6d   :  { %1423 = vmatprep.subr.bf16.mxu1 %v1651_v0 }
  0x6f   :  { %808 = vmatpush1.bf16.msra.mxu0 %v1607_v35 }
  0x70   :  { %809 = vmatprep.subr.bf16.mxu0 %v1612_v36  ;;  %1424 = vmatpush3.bf16.msra.mxu1 %v1652_v1  ;;  %v1673_v1 = vld [vmem:[%s1908_s7 + $0x8] sm:$0xff]  }
  0x71   :  { %1425 = vmatprep.subr.bf16.mxu1 %v1653_v2  ;;  %v1674_v2 = vld [vmem:[%s1908_s7] sm:$0xff]  }
  0x73   :  { %810 = vmatpush1.bf16.msra.mxu0 %v1610_v37 }
  0x74   :  { %811 = vmatprep.subr.bf16.mxu0 %v1615_v38  ;;  %1426 = vmatpush3.bf16.msra.mxu1 %v1654_v3  ;;  %v1404_v3 = vld [vmem:[%s1907_s6] ss:$0 sm:$0xff]  ;;  %s1755_s6 = smov [#allocation7]  }
  0x75   :  { %1427 = vmatprep.subr.bf16.mxu1 %v1655_v4 }
  0x77   :  { %812 = vmatpush1.bf16.msra.mxu0 %v1613_v39 }
  0x78   :  { %813 = vmatprep.subr.bf16.mxu0 %v1618_v40  ;;  %1428 = vmatpush3.bf16.msra.mxu1 %v1656_v5 }
  0x79   :  { %1429 = vmatprep.subr.bf16.mxu1 %v1657_v6 }
  0x7b   :  { %814 = vmatpush1.bf16.msra.mxu0 %v1616_v41 }
  0x7c   :  { %815 = vmatprep.subr.bf16.mxu0 %v1621_v42  ;;  %1430 = vmatpush3.bf16.msra.mxu1 %v1658_v7 }
  0x7d   :  { %1431 = vmatprep.subr.bf16.mxu1 %v1659_v8 }
  0x7f   :  { %816 = vmatpush2.bf16.msra.mxu0 %v1619_v44 }
  0x80   :  { %817 = vmatprep.subr.bf16.mxu0 %v1624_v45  ;;  %1432 = vmatpush3.bf16.msra.mxu1 %v1660_v9 }
  0x81   :  { %1433 = vmatprep.subr.bf16.mxu1 %v1661_v10 }
  0x83   :  { %818 = vmatpush2.bf16.msra.mxu0 %v1622_v46 }
  0x84   :  { %819 = vmatprep.subr.bf16.mxu0 %v1627_v47  ;;  %1434 = vmatpush3.bf16.msra.mxu1 %v1662_v11  ;;  %v1664_v47 = vld [vmem:[%s1906_s5 + $0x30] sm:$0xff]   ;;  %v1413_v11 = vld [vmem:[%s1909_s8] ss:$0 sm:$0xff] }
  0x85   :  { %1455 = vmatprep.subr.bf16.mxu1 %v1753_v12 }
  0x87   :  { %820 = vmatpush2.bf16.msra.mxu0 %v1625_v48  ;;  %v1665_v48 = vld [vmem:[%s1906_s5 + $0x28] sm:$0xff]  }
  0x88   :  { %821 = vmatprep.subr.bf16.mxu0 %v1630_v49  ;;  %v1666_v49 = vld [vmem:[%s1906_s5 + $0x20] sm:$0xff]  }
  0x8b   :  { %822 = vmatpush2.bf16.msra.mxu0 %v1628_v50  ;;  %v1667_v50 = vld [vmem:[%s1906_s5 + $0x18] sm:$0xff]  }
  0x8c   :  { %823 = vmatprep.subr.bf16.mxu0 %v1633_v51  ;;  %v1668_v51 = vld [vmem:[%s1906_s5 + $0x10] sm:$0xff]  }
  0x8f   :  { %824 = vmatpush2.bf16.msra.mxu0 %v1631_v52  ;;  %v1669_v52 = vld [vmem:[%s1906_s5 + $0x8] sm:$0xff]  }
  0x90   :  { %825 = vmatprep.subr.bf16.mxu0 %v1636_v53  ;;  %v1670_v53 = vld [vmem:[%s1906_s5] sm:$0xff]  }
  0x93   :  { %826 = vmatpush2.bf16.msra.mxu0 %v1634_v54  ;;  %v1671_v54 = vld [vmem:[%s1908_s7 + $0x18] sm:$0xff]  }
  0x94   :  { %827 = vmatprep.subr.bf16.mxu0 %v1639_v55  ;;  %v1672_v55 = vld [vmem:[%s1908_s7 + $0x10] sm:$0xff]   ;;  %s1278_s7 = sshll.u32 %s1755_s6, 4  ;;  %s1279_s7 = int_to_ptr.vmem [resolvable:$true] %s1278_s7 }
  0x95   :  { %s1719_s8 = scalar_lea.vmem %s1279_s7, 32  ;;  %p1724_p11 = scmp.lt.s32.totalorder %s1279_s7, %s1279_s7 }
  0x96   :  { %p1720_p10 = scmp.ne.s32.totalorder %s1279_s7, %s1719_s8  ;;  %p1725_p12 = scmp.lt.s32.totalorder %s1719_s8, %s1719_s8 }
  0x97   :  { %828 = vmatpush2.bf16.msra.mxu0 %v1637_v56 }
  0x98   :  { %829 = vmatprep.subr.bf16.mxu0 %v1645_v57  ;;  %v1387_v57 = vld [vmem:[%s1905_s4] ss:$0 sm:$0xff]  ;;  %p1726_p13 = por %p1725_p12, %p1724_p11 }
  0x9a   :  { %p1727_p0 = pnand %p1726_p13, %p1720_p10 }
  0x9b   :  { %830 = vmatpush2.bf16.msra.mxu0 %v1643_v58 }
  0x9c   :  { %1475 = vmatprep.subr.bf16.mxu0 %v1753_v12 }
  0x9e   :  { %832 = vmatmul.mubr.bf16.vlgmr.msra.gmra.mxu0 %v110_v59 }
  0x9f   :  { %1483 = vmatprep.mubr.msk.bf16.mxu0 %vm1754_vm1, %v1753_v12  ;;  %1476 = vmatpush3.bf16.msra.mxu0 %v1671_v54 }
  0xa0   :  { %1477 = vmatprep.subr.bf16.mxu0 %v1753_v12 }
  0xa3   :  { %1478 = vmatpush3.bf16.msra.mxu0 %v1672_v55 }
  0xa4   :  { %1479 = vmatprep.subr.bf16.mxu0 %v1753_v12 }
  0xa7   :  { %1480 = vmatpush3.bf16.msra.mxu0 %v1673_v1 }
  0xa8   :  { %1481 = vmatprep.subr.bf16.mxu0 %v1753_v12 }
  0xab   :  { %1482 = vmatpush3.bf16.msra.mxu0 %v1674_v2 }
 0x11e   :  { %v751_v13 = vpop.f32.mrf.mxu0 }
 0x11f   :  { %v792_v15 = vpop.f32.mrf.mxu1  ;;  %v752_v30 = vadd.f32 %v751_v13, %v216_v28 }
 0x120   :  { %v753_v14 = vpop.f32.mrf.mxu0 }
 0x121   :  { %v794_v17 = vpop.f32.mrf.mxu1  ;;  %v754_v31 = vadd.f32 %v753_v14, %v220_v29  ;;  %v793_v32 = vadd.f32 %v792_v15, %v752_v30 }
 0x122   :  { %v755_v16 = vpop.f32.mrf.mxu0 }
 0x123   :  { %v796_v19 = vpop.f32.mrf.mxu1  ;;  %v795_v34 = vadd.f32 %v794_v17, %v754_v31 }
 0x124   :  { %v756_v18 = vpop.f32.mrf.mxu0 }
 0x125   :  { %v797_v20 = vpop.f32.mrf.mxu1 }
 0x127   :  { %v874_v21 = vpop.f32.mrf.mxu1 }
 0x129   :  { %v876_v22 = vpop.f32.mrf.mxu1 }
 0x12b   :  { %v878_v23 = vpop.f32.mrf.mxu1 }
 0x12d   :  { %v879_v24 = vpop.f32.mrf.mxu1 }
 0x15e   :  { %v833_v33 = vpop.f32.mrf.mxu0 }
 0x15f   :  { %v834_v35 = vadd.f32 %v833_v33, %v793_v32 }
 0x160   :  { %v835_v36 = vpop.f32.mrf.mxu0 }
 0x161   :  { %v875_v37 = vadd.f32 %v874_v21, %v834_v35  ;;  %v836_v38 = vadd.f32 %v835_v36, %v795_v34 }
 0x162   :  { %v837_v39 = vpop.f32.mrf.mxu0 }
 0x163   :  { %v877_v40 = vadd.f32 %v876_v22, %v836_v38  ;;  %v881_v41 = vmax.f32 %v875_v37, 0.0 }
 0x164   :  { %v838_v42 = vpop.f32.mrf.mxu0 }
 0x165   :  { %v882_v44 = vmax.f32 %v877_v40, 0.0  ;;  %v883_v46 = vpack.c.bf16 %v881_v41, %v881_v41 }
 0x167   :  { %v884_v45 = vpack.c.bf16 %v882_v44, %v882_v44 }
 0x169   :  { %1052 = vmatprep.mubr.bf16.mxu1 %v884_v45 }
 0x16a   :  { %1053 = vmatmul.mubr.bf16.vlgmr.msra.gmra.mxu1 %v883_v46 }
 0x16b   :  { %1456 = vmatpush3.bf16.msra.mxu1 %v1663_v43  ;;  %1471 = vmatprep.mubr.msk.bf16.mxu1 %vm1754_vm1, %v1753_v12 }
 0x16c   :  { %1457 = vmatprep.subr.bf16.mxu1 %v1753_v12 }
 0x16f   :  { %1458 = vmatpush3.bf16.msra.mxu1 %v1664_v47 }
 0x170   :  { %1459 = vmatprep.subr.bf16.mxu1 %v1753_v12 }
 0x173   :  { %1460 = vmatpush3.bf16.msra.mxu1 %v1665_v48 }
 0x174   :  { %1461 = vmatprep.subr.bf16.mxu1 %v1753_v12 }
 0x177   :  { %1462 = vmatpush3.bf16.msra.mxu1 %v1666_v49 }
 0x178   :  { %1463 = vmatprep.subr.bf16.mxu1 %v1753_v12 }
 0x17b   :  { %1464 = vmatpush3.bf16.msra.mxu1 %v1667_v50 }
 0x17c   :  { %1465 = vmatprep.subr.bf16.mxu1 %v1753_v12 }
 0x17f   :  { %1466 = vmatpush3.bf16.msra.mxu1 %v1668_v51 }
 0x180   :  { %1467 = vmatprep.subr.bf16.mxu1 %v1753_v12 }
 0x183   :  { %1468 = vmatpush3.bf16.msra.mxu1 %v1669_v52 }
 0x184   :  { %1469 = vmatprep.subr.bf16.mxu1 %v1753_v12 }
 0x187   :  { %1470 = vmatpush3.bf16.msra.mxu1 %v1670_v53 }
 0x22a   :  { %v1435_v56 = vpop.f32.mrf.mxu1 }
 0x22c   :  { %v1436_v58 = vpop.f32.mrf.mxu1 }
 0x22d   :  { %v1437_v59 = vadd.f32 %v1436_v58, %v1435_v56 }
 0x22e   :  { %v1438_v60 = vpop.f32.mrf.mxu1 }
 0x22f   :  { %v1055_v61 = vadd.f32 %v1437_v59, %v1387_v57 }
 0x230   :  { %v1439_v62 = vpop.f32.mrf.mxu1 }
 0x231   :  { %v1060_v63 = vmax.f32 %v1055_v61, 0.0 }
 0x233   :  { %v1061_v0 = vpack.c.bf16 %v1060_v63, %v1060_v63 }
 0x235   :  { %1472 = vmatmul.mubr.bf16.vlgmr.msra.gmra.mxu1 %v1061_v0 }
 0x2f5   :  { %v1167_v4 = vpop.f32.mrf.mxu1 }
 0x2f6   :  { %v1168_v5 = vadd.f32 %v1404_v3, %v1167_v4 }
 0x2f7   :  { %v1473_v6 = vpop.f32.mrf.mxu1 }
 0x2f8   :  { %v1173_v7 = vmax.f32 %v1168_v5, 0.0 }
 0x2f9   :  { %v1170_v8 = vpop.f32.mrf.mxu1 }
 0x2fa   :  { %v1174_v9 = vpack.c.bf16 %v1173_v7, %v1173_v7 }
 0x2fb   :  { %v1474_v10 = vpop.f32.mrf.mxu1 }
 0x2fc   :  { %1484 = vmatmul.mubr.msk.bf16.vlgmr.msra.gmra.mxu0 %vm1214_vm2, %v1174_v9 }
 0x3bc   :  { %v1252_v12 = vpop.f32.mrf.mxu0 }
 0x3bd   :  { %v1253_v13 = vadd.f32 %v1413_v11, %v1252_v12 }
 0x3be   :  { %v1485_v14 = vpop.f32.mrf.mxu0 }
 0x3bf   :  { %v1259_v15 = vsel %vm1258_vm3, %v1253_v13, -inf }
 0x3c0   :  { %1260 = vmax.xlane.f32.xlu0 %v1259_v15  ;;  %v1255_v16 = vpop.f32.mrf.mxu0 }
 0x3c2   :  { %v1486_v17 = vpop.f32.mrf.mxu0 }
 0x449   :  { %v1261_v18 = vpop.xlane.xlu0 %1260 }
 0x44a   :  { %v1262_v19 = vsub.f32 %v1253_v13, %v1261_v18 }
 0x44c   :  { %v1263_v20 = vmul.f32 1.442695, %v1262_v19 }
 0x44e   :  { %1675 = vpow2.f32 %v1263_v20 }
 0x45b   :  { %v1676_v21 = vpop.eup %1675 }
 0x45c   :  { %v1265_v22 = vsel %vm1258_vm3, %v1676_v21, 0.0 }
 0x45d   :  { %1266 = vadd.xlane.f32.xlu0 %v1265_v22 }
 0x4e6   :  { %v1267_v23 = vpop.xlane.xlu0 %1266 }
 0x4e7   :  { %1677 = vlog2.f32 %v1267_v23 }
 0x4f4   :  { %v1678_v24 = vpop.eup %1677 }
 0x4f5   :  { %v1269_v25 = vmul.f32 0.6931472, %v1678_v24 }
 0x4f7   :  { %v1270_v26 = vsub.f32 %v1262_v19, %v1269_v25 }
 0x4f9   :  { %1271 = vst [vmem:[#allocation7] sm:$0x3] %v1270_v26 }
 0x4fa   :  { %1730 = shalt.err (!%p1727_p0)
}
 0x4fb   :  { %1281 = dma.vmem_to_hbm [thread:$0]  %s1279_s7, 32, %s1910_s9, [#allocation4]  }
 0x4fc   :  { %1743 = dma.done.wait [#allocation4], 32  }
 0x4fd   :  { %1744 = vsyncadd [#allocation4], 4294967264 }
 0x4fe   :  { %1285 = vsyncpa [#allocation3], 1 }
 0x4ff   :  { %1286 = vsyncpa [#allocation6], 1 }
 0x500   :  { %1287 = vsyncpa [#allocation4], 1 }

</bundles_post_ra>
